<compile_context>
chip_gen: v5e
topology: v5e:2x2
jax: 0.10.0
libtpu: 0.0.40
codegen_flags: <defaults>
</compile_context>

<pallas_src>
import jax
import jax.numpy as jnp
from jax.experimental import pallas as pl
from jax.experimental.pallas import tpu as pltpu


_LANE = 128


def _round_up(n, m):
    return ((n + m - 1) // m) * m


def _cdiv(a, b):
    return -(-a // b)


def _num_tensorcores():
    """2 TensorCores per chip on v7x, 1 on v5e/v6e."""
    try:
        kind = jax.devices()[0].device_kind.lower()
    except Exception:
        return 1
    return 2 if "v7" in kind else 1


def _vmem_capacity_bytes():
    try:
        return int(pltpu.get_tpu_info().vmem_capacity_bytes)
    except Exception:
        return 128 * 1024 * 1024  # v5e/v6e physical VMEM


def _pick_batch_tile(batch, *, granule, max_rows, num_cores):
    """Choose the per-step row tile.

    * 1 TC: prefer a single full-batch tile when it fits the row budget
      (extra grid steps on a single core are pure overhead).
    * 2 TCs: ensure an even number of steps so both cores get equal work.
    Multi-step tiles are multiples of `granule`; the caller zero-pads the
    batch up to a tile multiple (never a giant untiled fallback block).
    """
    max_rows = max(granule, (max_rows // granule) * granule)
    if num_cores <= 1:
        if batch <= max_rows:
            return batch                 # grid=(1,) -> zero per-step overhead
        return max_rows
    steps = max(num_cores, _cdiv(batch, max_rows))
    steps = _round_up(steps, num_cores)  # even split across cores
    return min(max_rows, max(granule, _round_up(_cdiv(batch, steps), granule)))


def encoder_kernel(x_ref, w1_ref, b1_ref, w2_ref, b2_ref, w3_ref, b3_ref, z_ref):
    # Layer 1: bf16 matmul inputs, f32 accumulate + bias + ReLU.
    x = x_ref[...]
    if x.dtype != jnp.bfloat16:
        x = x.astype(jnp.bfloat16)
    h = jnp.dot(x, w1_ref[...], preferred_element_type=jnp.float32) + b1_ref[...]
    h = jnp.maximum(h, 0.0).astype(jnp.bfloat16)
    # Layer 2.
    h = jnp.dot(h, w2_ref[...], preferred_element_type=jnp.float32) + b2_ref[...]
    h = jnp.maximum(h, 0.0).astype(jnp.bfloat16)
    # Layer 3: latent output written unpadded (lane-masked store, but 4x fewer
    # output bytes and no extra XLA slice pass).
    z = jnp.dot(h, w3_ref[...], preferred_element_type=jnp.float32) + b3_ref[...]
    z_ref[...] = jnp.maximum(z, 0.0).astype(z_ref.dtype)


def encoder_forward(x, params, *, batch_tile=None):
    """x: [B, in_size] (f32 or bf16). params: w1,b1,w2,b2,w3,b3, w_i in [in, out]."""
    B, in_size = x.shape
    w1, b1 = params["w1"], params["b1"]
    w2, b2 = params["w2"], params["b2"]
    w3, b3 = params["w3"], params["b3"]
    h1, h2, latent = w1.shape[1], w2.shape[1], w3.shape[1]
    assert w1.shape[0] == in_size and w2.shape[0] == h1 and w3.shape[0] == h2

    # Pad the two hidden widths (layer-1/2 N dims and layer-2/3 K dims) to a
    # multiple of 128 lanes; keep them at 128 (not 256): M is the only useful
    # MXU lever for these shapes.  Numerically exact (zero bias + ReLU keep
    # pad columns at 0, zero weight rows contribute nothing).
    h1p, h2p = _round_up(h1, _LANE), _round_up(h2, _LANE)

    def pad2(w, rpad, cpad):
        return jnp.pad(w, ((0, rpad), (0, cpad))) if (rpad or cpad) else w

    w1p = pad2(w1, 0, h1p - h1).astype(jnp.bfloat16)
    w2p = pad2(w2, h1p - h1, h2p - h2).astype(jnp.bfloat16)
    w3p = pad2(w3, h2p - h2, 0).astype(jnp.bfloat16)          # latent unpadded
    b1p = jnp.pad(b1, (0, h1p - h1)).reshape(1, h1p).astype(jnp.float32)
    b2p = jnp.pad(b2, (0, h2p - h2)).reshape(1, h2p).astype(jnp.float32)
    b3p = b3.reshape(1, latent).astype(jnp.float32)

    # --- VMEM budgeting (generation-aware) ---------------------------------
    x_bytes = jnp.dtype(x.dtype).itemsize
    out_bytes = x_bytes                                      # output dtype == x dtype
    granule = {4: 8, 2: 16, 1: 32}.get(x_bytes, 8)           # sublane packing per dtype

    weight_elems = in_size * h1p + h1p * h2p + h2p * latent
    bias_elems = h1p + h2p + latent
    # Weight/bias blocks are loop-invariant but still double-buffered by the
    # default pipeline; count both copies.
    # TODO(synk): mark the six weight/bias BlockSpecs pipeline_mode=pl.Buffered(1)
    # once in_size grows enough for weight VMEM to matter; at these sizes it
    # saves < 100 KiB.
    resident = 2 * (2 * weight_elems + 4 * bias_elems)
    # Double-buffered x/z row tiles + f32/bf16 intermediate temporaries.
    per_row = (2 * in_size * x_bytes + 2 * latent * out_bytes
               + (h1p + h2p) * 6 + latent * 4)

    capacity = _vmem_capacity_bytes()
    limit_cap = min(int(0.75 * capacity), 100 * 1024 * 1024)
    row_budget = max(limit_cap - resident - (2 << 20), 1 << 20)
    max_rows = max(granule, min(4096, row_budget // per_row))

    num_cores = _num_tensorcores()
    if batch_tile is None:
        batch_tile = _pick_batch_tile(B, granule=granule, max_rows=max_rows,
                                      num_cores=num_cores)

    # Zero-pad awkward batch sizes up to a tile multiple (padded rows are
    # sliced off below; they only add throwaway compute, never wrong results).
    Bp = _round_up(B, batch_tile)
    x_in = jnp.pad(x, ((0, Bp - B), (0, 0))) if Bp != B else x
    grid = (Bp // batch_tile,)

    const = lambda i: (0, 0)  # loop-invariant weight / bias blocks

    flops = 2 * Bp * weight_elems
    bytes_accessed = (
        Bp * in_size * x_bytes            # activations in
        + 2 * weight_elems                # bf16 weights
        + 4 * bias_elems                  # f32 biases
        + Bp * latent * out_bytes         # activations out (unpadded)
    )
    vmem_needed = resident + batch_tile * per_row + (2 << 20)
    vmem_limit = int(min(limit_cap, max(vmem_needed, 16 * 1024 * 1024)))

    z = pl.pallas_call(
        encoder_kernel,
        out_shape=jax.ShapeDtypeStruct((Bp, latent), x.dtype),
        grid_spec=pltpu.PrefetchScalarGridSpec(
            num_scalar_prefetch=0,
            grid=grid,
            in_specs=[
                pl.BlockSpec((batch_tile, in_size), lambda i: (i, 0)),
                pl.BlockSpec((in_size, h1p), const),
                pl.BlockSpec((1, h1p), const),
                pl.BlockSpec((h1p, h2p), const),
                pl.BlockSpec((1, h2p), const),
                pl.BlockSpec((h2p, latent), const),
                pl.BlockSpec((1, latent), const),
            ],
            out_specs=pl.BlockSpec((batch_tile, latent), lambda i: (i, 0)),
        ),
        compiler_params=pltpu.CompilerParams(
            dimension_semantics=("parallel",),
            vmem_limit_bytes=vmem_limit,
        ),
        cost_estimate=pl.CostEstimate(
            flops=flops, transcendentals=0, bytes_accessed=bytes_accessed),
    )(x_in, w1p, b1p, w2p, b2p, w3p, b3p)

    return z[:B] if Bp != B else z


def init_encoder_params(key, in_size, latent_size, dtype=jnp.float32):
    """Deterministic synthetic init (shapes match the nn.Linear layers)."""
    h1 = in_size // 2
    h2 = in_size // 4
    k1, k2, k3, k4, k5, k6 = jax.random.split(key, 6)
    scale = lambda fan_in: 1.0 / jnp.sqrt(jnp.asarray(fan_in, dtype))
    return {
        "w1": jax.random.uniform(k1, (in_size, h1), dtype, -1, 1) * scale(in_size),
        "b1": jax.random.uniform(k2, (h1,), dtype, -1, 1) * scale(in_size),
        "w2": jax.random.uniform(k3, (h1, h2), dtype, -1, 1) * scale(h1),
        "b2": jax.random.uniform(k4, (h2,), dtype, -1, 1) * scale(h1),
        "w3": jax.random.uniform(k5, (h2, latent_size), dtype, -1, 1) * scale(h2),
        "b3": jax.random.uniform(k6, (latent_size,), dtype, -1, 1) * scale(h2),
    }


def encoder_reference(x, params, *, matmul_dtype=jnp.float32):
    relu = lambda v: jnp.maximum(v, 0.0)
    cast = lambda a: a.astype(matmul_dtype)
    h = relu(jnp.dot(cast(x), cast(params["w1"]),
                     preferred_element_type=jnp.float32) + params["b1"])
    h = relu(jnp.dot(cast(h), cast(params["w2"]),
                     preferred_element_type=jnp.float32) + params["b2"])
    return relu(jnp.dot(cast(h), cast(params["w3"]),
                        preferred_element_type=jnp.float32) + params["b3"])


if __name__ == "__main__":
    in_size = 128        # h1 = 64, h2 = 32 (as in the PyTorch module)
    latent_size = 32
    batch = 256

    key = jax.random.PRNGKey(0)
    kx, kp = jax.random.split(key)
    x = jax.random.normal(kx, (batch, in_size), jnp.float32)
    params = init_encoder_params(kp, in_size, latent_size)

    z = jax.block_until_ready(encoder_forward(x, params))
    assert z.shape == (batch, latent_size)

    # bf16-matmul reference (matches the kernel's numerics closely).
    z_bf16_ref = encoder_reference(x, params, matmul_dtype=jnp.bfloat16)
    assert jnp.allclose(z, z_bf16_ref, atol=2e-3, rtol=2e-3)

    # Full-precision reference (loose tolerance: kernel uses bf16 matmul inputs).
    z_f32_ref = encoder_reference(x, params)
    assert jnp.allclose(z, z_f32_ref, atol=3e-2, rtol=3e-2)

    # Exercise the padded-batch / multi-step path as well (odd batch size).
    x_odd = jax.random.normal(kx, (200, in_size), jnp.float32)
    z_odd = jax.block_until_ready(encoder_forward(x_odd, params, batch_tile=64))
    assert z_odd.shape == (200, latent_size)
    assert jnp.allclose(z_odd, encoder_reference(x_odd, params), atol=3e-2, rtol=3e-2)

    print("KERNEL_OK")
</pallas_src>

<mosaic_0001>
module attributes {stable_mosaic.version = 11 : i64} {
  func.func @encoder_kernel(%arg0: i32, %arg1: memref<256x128xf32, #tpu.memory_space<vmem>>, %arg2: memref<128x128xbf16, #tpu.memory_space<vmem>>, %arg3: memref<1x128xf32, #tpu.memory_space<vmem>>, %arg4: memref<128x128xbf16, #tpu.memory_space<vmem>>, %arg5: memref<1x128xf32, #tpu.memory_space<vmem>>, %arg6: memref<128x32xbf16, #tpu.memory_space<vmem>>, %arg7: memref<1x32xf32, #tpu.memory_space<vmem>>, %arg8: memref<256x32xf32, #tpu.memory_space<vmem>>) attributes {dimension_semantics = [#tpu.dimension_semantics<parallel>], iteration_bounds = array<i64: 1>, scalar_prefetch = 0 : i64, scratch_operands = 0 : i64, tpu.core_type = #tpu.core_type<tc>, window_params = [{transform_indices = @transform_0, window_bounds = array<i64: 256, 128>}, {pipeline_mode = #tpu.pipeline_mode<synchronous>, transform_indices = @transform_1, window_bounds = array<i64: 128, 128>}, {pipeline_mode = #tpu.pipeline_mode<synchronous>, transform_indices = @transform_2, window_bounds = array<i64: 1, 128>}, {pipeline_mode = #tpu.pipeline_mode<synchronous>, transform_indices = @transform_3, window_bounds = array<i64: 128, 128>}, {pipeline_mode = #tpu.pipeline_mode<synchronous>, transform_indices = @transform_4, window_bounds = array<i64: 1, 128>}, {pipeline_mode = #tpu.pipeline_mode<synchronous>, transform_indices = @transform_5, window_bounds = array<i64: 128, 32>}, {pipeline_mode = #tpu.pipeline_mode<synchronous>, transform_indices = @transform_6, window_bounds = array<i64: 1, 32>}, {transform_indices = @transform_7, window_bounds = array<i64: 256, 32>}]} {
    %c0 = arith.constant 0 : index
    %c0_0 = arith.constant 0 : index
    %0 = vector.load %arg1[%c0, %c0_0] : memref<256x128xf32, #tpu.memory_space<vmem>>, vector<256x128xf32>
    %1 = arith.truncf %0 : vector<256x128xf32> to vector<256x128xbf16>
    %c0_1 = arith.constant 0 : index
    %c0_2 = arith.constant 0 : index
    %2 = vector.load %arg2[%c0_1, %c0_2] : memref<128x128xbf16, #tpu.memory_space<vmem>>, vector<128x128xbf16>
    %cst = arith.constant dense<0.000000e+00> : vector<256x128xf32>
    %3 = tpu.matmul %1, %2, %cst {dimension_numbers = #tpu.dot_dimension_numbers<[1], [0], [0], [1], [0, 0, 1, 1], [], []>} : vector<256x128xbf16>, vector<128x128xbf16>, vector<256x128xf32> -> vector<256x128xf32>
    %c0_3 = arith.constant 0 : index
    %c0_4 = arith.constant 0 : index
    %4 = vector.load %arg3[%c0_3, %c0_4] : memref<1x128xf32, #tpu.memory_space<vmem>>, vector<1x128xf32>
    %5 = vector.broadcast %4 : vector<1x128xf32> to vector<256x128xf32>
    %6 = arith.addf %3, %5 : vector<256x128xf32>
    %cst_5 = arith.constant 0.000000e+00 : f32
    %7 = vector.broadcast %cst_5 : f32 to vector<256x128xf32>
    %8 = arith.maximumf %6, %7 : vector<256x128xf32>
    %9 = arith.truncf %8 : vector<256x128xf32> to vector<256x128xbf16>
    %c0_6 = arith.constant 0 : index
    %c0_7 = arith.constant 0 : index
    %10 = vector.load %arg4[%c0_6, %c0_7] : memref<128x128xbf16, #tpu.memory_space<vmem>>, vector<128x128xbf16>
    %cst_8 = arith.constant dense<0.000000e+00> : vector<256x128xf32>
    %11 = tpu.matmul %9, %10, %cst_8 {dimension_numbers = #tpu.dot_dimension_numbers<[1], [0], [0], [1], [0, 0, 1, 1], [], []>} : vector<256x128xbf16>, vector<128x128xbf16>, vector<256x128xf32> -> vector<256x128xf32>
    %c0_9 = arith.constant 0 : index
    %c0_10 = arith.constant 0 : index
    %12 = vector.load %arg5[%c0_9, %c0_10] : memref<1x128xf32, #tpu.memory_space<vmem>>, vector<1x128xf32>
    %13 = vector.broadcast %12 : vector<1x128xf32> to vector<256x128xf32>
    %14 = arith.addf %11, %13 : vector<256x128xf32>
    %cst_11 = arith.constant 0.000000e+00 : f32
    %15 = vector.broadcast %cst_11 : f32 to vector<256x128xf32>
    %16 = arith.maximumf %14, %15 : vector<256x128xf32>
    %17 = arith.truncf %16 : vector<256x128xf32> to vector<256x128xbf16>
    %c0_12 = arith.constant 0 : index
    %c0_13 = arith.constant 0 : index
    %18 = vector.load %arg6[%c0_12, %c0_13] : memref<128x32xbf16, #tpu.memory_space<vmem>>, vector<128x32xbf16>
    %cst_14 = arith.constant dense<0.000000e+00> : vector<256x32xf32>
    %19 = tpu.matmul %17, %18, %cst_14 {dimension_numbers = #tpu.dot_dimension_numbers<[1], [0], [0], [1], [0, 0, 1, 1], [], []>} : vector<256x128xbf16>, vector<128x32xbf16>, vector<256x32xf32> -> vector<256x32xf32>
    %c0_15 = arith.constant 0 : index
    %c0_16 = arith.constant 0 : index
    %20 = vector.load %arg7[%c0_15, %c0_16] : memref<1x32xf32, #tpu.memory_space<vmem>>, vector<1x32xf32>
    %21 = vector.broadcast %20 : vector<1x32xf32> to vector<256x32xf32>
    %22 = arith.addf %19, %21 : vector<256x32xf32>
    %cst_17 = arith.constant 0.000000e+00 : f32
    %23 = vector.broadcast %cst_17 : f32 to vector<256x32xf32>
    %24 = arith.maximumf %22, %23 : vector<256x32xf32>
    %c0_18 = arith.constant 0 : index
    %c0_19 = arith.constant 0 : index
    %25 = vector.load %arg8[%c0_18, %c0_19] : memref<256x32xf32, #tpu.memory_space<vmem>>, vector<256x32xf32>
    tpu.vector_store %arg8[%c0_18, %c0_19], %24 {strides = array<i32>} : memref<256x32xf32, #tpu.memory_space<vmem>>, vector<256x32xf32>,
    return
  }
  func.func @transform_0(%arg0: i32) -> (i32, i32) {
    %c0_i32 = arith.constant 0 : i32
    %c0_i32_0 = arith.constant 0 : i32
    return %arg0, %c0_i32 : i32, i32
  }
  func.func @transform_1(%arg0: i32) -> (i32, i32) {
    %c0_i32 = arith.constant 0 : i32
    %c0_i32_0 = arith.constant 0 : i32
    %c0_i32_1 = arith.constant 0 : i32
    return %c0_i32, %c0_i32_0 : i32, i32
  }
  func.func @transform_2(%arg0: i32) -> (i32, i32) {
    %c0_i32 = arith.constant 0 : i32
    %c0_i32_0 = arith.constant 0 : i32
    %c0_i32_1 = arith.constant 0 : i32
    return %c0_i32, %c0_i32_0 : i32, i32
  }
  func.func @transform_3(%arg0: i32) -> (i32, i32) {
    %c0_i32 = arith.constant 0 : i32
    %c0_i32_0 = arith.constant 0 : i32
    %c0_i32_1 = arith.constant 0 : i32
    return %c0_i32, %c0_i32_0 : i32, i32
  }
  func.func @transform_4(%arg0: i32) -> (i32, i32) {
    %c0_i32 = arith.constant 0 : i32
    %c0_i32_0 = arith.constant 0 : i32
    %c0_i32_1 = arith.constant 0 : i32
    return %c0_i32, %c0_i32_0 : i32, i32
  }
  func.func @transform_5(%arg0: i32) -> (i32, i32) {
    %c0_i32 = arith.constant 0 : i32
    %c0_i32_0 = arith.constant 0 : i32
    %c0_i32_1 = arith.constant 0 : i32
    return %c0_i32, %c0_i32_0 : i32, i32
  }
  func.func @transform_6(%arg0: i32) -> (i32, i32) {
    %c0_i32 = arith.constant 0 : i32
    %c0_i32_0 = arith.constant 0 : i32
    %c0_i32_1 = arith.constant 0 : i32
    return %c0_i32, %c0_i32_0 : i32, i32
  }
  func.func @transform_7(%arg0: i32) -> (i32, i32) {
    %c0_i32 = arith.constant 0 : i32
    %c0_i32_0 = arith.constant 0 : i32
    return %arg0, %c0_i32 : i32, i32
  }
}

</mosaic_0001>

<bundles_post_ra>
// kernel: tpu_custom_call.1
= control target key start
LH: loop header
LB: loop body
LE: loop exit
PB: predicated region body
PF: predicated region fallthrough
CT: control target
= control target key end

     0   :  { %12 = vsyncpa [#allocation3], 0  ;;  %s1288_s0 = inlined_call_operand.hbm [shape: f32[256,128], index: 0, kind: input, shape index: {}]   ;;  %s1289_s1 = inlined_call_operand.vmem [shape: bf16[128,128], index: 1, kind: input, shape index: {}]   ;;  %s1290_s2 = inlined_call_operand.vmem [shape: f32[1,128], index: 2, kind: input, shape index: {}]   ;;  %s1291_s3 = inlined_call_operand.hbm [shape: bf16[128,128], index: 3, kind: input, shape index: {}]   ;;  %s1292_s4 = inlined_call_operand.vmem [shape: f32[1,128], index: 4, kind: input, shape index: {}]   ;;  %s1293_s5 = inlined_call_operand.vmem [shape: bf16[128,32], index: 5, kind: input, shape index: {}]   ;;  %s1294_s6 = inlined_call_operand.vmem [shape: f32[1,32], index: 6, kind: input, shape index: {}]   ;;  %s1295_s7 = inlined_call_operand.vmem [shape: f32[256,32], index: 7, kind: output, shape index: {}]  }
   0x1   :  { %s18_s26 = sshll.u32 %s1288_s0, 4  ;;  %s19_s26 = int_to_ptr.hbm [resolvable:$true] %s18_s26 }
   0x2   :  { %13 = vsyncpa [#allocation5], 0  ;;  %s949_s27 = smov [#allocation2]   ;;  %s35_s8 = sshll.u32 %s1291_s3, 4  ;;  %s36_s8 = int_to_ptr.hbm [resolvable:$true] %s35_s8 }
   0x3   :  { %s20_s28 = sshll.u32 %s949_s27, 4  ;;  %s950_s9 = smov 128   ;;  %s21_s28 = int_to_ptr.vmem [resolvable:$true] %s20_s28 }
   0x4   :  { %s951_s10 = smov 8   ;;  %s952_s11 = smov [#allocation4]  }
   0x5   :  { %26 = dma.hbm_to_vmem [thread:$0]  %s19_s26, 4096, %s21_s28, [#allocation3], %s950_s9, %s950_s9, %s951_s10  }
   0x6   :  { %s37_s12 = sshll.u32 %s952_s11, 4  ;;  %s953_s13 = smov 64   ;;  %s38_s12 = int_to_ptr.vmem [resolvable:$true] %s37_s12 }
   0x7   :  { %s954_s14 = smov 4  }
   0x8   :  { %43 = dma.hbm_to_vmem [thread:$0]  %s36_s8, 1024, %s38_s12, [#allocation5], %s953_s13, %s953_s13, %s954_s14  }
   0x9   :  { %945 = dma.done.wait [#allocation3], 4096  }
   0xa   :  { %946 = vsyncadd [#allocation3], 4294963200 }
   0xb   :  { %947 = dma.done.wait [#allocation5], 1024  }
   0xc   :  { %948 = vsyncadd [#allocation5], 4294966272  ;;  %v847_v0 = vld [vmem:[%s1289_s1 + $0x38] sm:$0xff]  ;;  %v846_v1 = vld [vmem:[%s1289_s1 + $0x30] sm:$0xff]  ;;  %vm705_vm0 = vcmask 261120  }
   0xd   :  { %174 = vmatpush.bf16.msra.mxu0 %v847_v0  ;;  %864 = vmatpush.bf16.msra.mxu3 %v847_v0  ;;  %v845_v2 = vld [vmem:[%s1289_s1 + $0x28] sm:$0xff]  ;;  %v844_v3 = vld [vmem:[%s1289_s1 + $0x20] sm:$0xff]  ;;  %v843_v4 = vld [vmem:[%s1289_s1 + $0x18] sm:$0xff] }
   0xe   :  { %v842_v5 = vld [vmem:[%s1289_s1 + $0x10] sm:$0xff]  ;;  %v841_v6 = vld [vmem:[%s1289_s1 + $0x8] sm:$0xff]  ;;  %v840_v7 = vld [vmem:[%s1289_s1] sm:$0xff] }
   0xf   :  { %v58_v8 = vld [vmem:[#allocation2] sm:$0xff]  ;;  %v59_v9 = vld [vmem:[#allocation2 + $0x8] sm:$0xff]  ;;  %v60_v11 = vld [vmem:[#allocation2 + $0x10] sm:$0xff] }
  0x10   :  { %v90_v10 = vpack.c.bf16 %v59_v9, %v58_v8  ;;  %v61_v12 = vld [vmem:[#allocation2 + $0x18] sm:$0xff]  ;;  %v62_v14 = vld [vmem:[#allocation2 + $0x20] sm:$0xff]  ;;  %v63_v15 = vld [vmem:[#allocation2 + $0x28] sm:$0xff] }
  0x11   :  { %175 = vmatpush.bf16.msra.mxu0 %v846_v1  ;;  %865 = vmatpush.bf16.msra.mxu3 %v846_v1  ;;  %v91_v13 = vpack.c.bf16 %v61_v12, %v60_v11  ;;  %v92_v16 = vpack.c.bf16 %v63_v15, %v62_v14  ;;  %v64_v17 = vld [vmem:[#allocation2 + $0x30] sm:$0xff]  ;;  %v65_v18 = vld [vmem:[#allocation2 + $0x38] sm:$0xff]  ;;  %v82_v20 = vld [vmem:[#allocation2 + $0xc0] sm:$0xff] }
  0x12   :  { %v93_v19 = vpack.c.bf16 %v65_v18, %v64_v17  ;;  %v83_v21 = vld [vmem:[#allocation2 + $0xc8] sm:$0xff]  ;;  %v66_v23 = vld [vmem:[#allocation2 + $0x40] sm:$0xff]  ;;  %v84_v26 = vld [vmem:[#allocation2 + $0xd0] sm:$0xff] }
  0x13   :  { %v102_v22 = vpack.c.bf16 %v83_v21, %v82_v20  ;;  %v67_v24 = vld [vmem:[#allocation2 + $0x48] sm:$0xff]  ;;  %v85_v27 = vld [vmem:[#allocation2 + $0xd8] sm:$0xff]  ;;  %v68_v30 = vld [vmem:[#allocation2 + $0x50] sm:$0xff] }
  0x14   :  { %v94_v25 = vpack.c.bf16 %v67_v24, %v66_v23  ;;  %v855_v28 = vld [vmem:[#allocation4 + $0x38] sm:$0xff]  ;;  %v103_v29 = vpack.c.bf16 %v85_v27, %v84_v26  ;;  %v854_v33 = vld [vmem:[#allocation4 + $0x30] sm:$0xff]  ;;  %v86_v34 = vld [vmem:[#allocation2 + $0xe0] sm:$0xff] }
  0x15   :  { %176 = vmatpush.bf16.msra.mxu0 %v845_v2  ;;  %866 = vmatpush.bf16.msra.mxu3 %v845_v2  ;;  %v69_v31 = vld [vmem:[#allocation2 + $0x58] sm:$0xff]  ;;  %v853_v35 = vld [vmem:[#allocation4 + $0x28] sm:$0xff]  ;;  %v852_v38 = vld [vmem:[#allocation4 + $0x20] sm:$0xff] }
  0x16   :  { %379 = vmatpush.bf16.msra.mxu1 %v855_v28  ;;  %v95_v32 = vpack.c.bf16 %v69_v31, %v68_v30  ;;  %v87_v36 = vld [vmem:[#allocation2 + $0xe8] sm:$0xff]  ;;  %v70_v39 = vld [vmem:[#allocation2 + $0x60] sm:$0xff]  ;;  %v851_v41 = vld [vmem:[#allocation4 + $0x18] sm:$0xff] }
  0x17   :  { %v104_v37 = vpack.c.bf16 %v87_v36, %v86_v34  ;;  %v71_v40 = vld [vmem:[#allocation2 + $0x68] sm:$0xff]  ;;  %v850_v43 = vld [vmem:[#allocation4 + $0x10] sm:$0xff]  ;;  %v848_v45 = vld [vmem:[#allocation4] sm:$0xff] }
  0x18   :  { %v96_v42 = vpack.c.bf16 %v71_v40, %v70_v39  ;;  %v849_v44 = vld [vmem:[#allocation4 + $0x8] sm:$0xff]  ;;  %v88_v46 = vld [vmem:[#allocation2 + $0xf0] sm:$0xff]  ;;  %v89_v47 = vld [vmem:[#allocation2 + $0xf8] sm:$0xff] }
  0x19   :  { %177 = vmatpush.bf16.msra.mxu0 %v844_v3  ;;  %867 = vmatpush.bf16.msra.mxu3 %v844_v3  ;;  %v72_v48 = vld [vmem:[#allocation2 + $0x70] sm:$0xff]  ;;  %v73_v49 = vld [vmem:[#allocation2 + $0x78] sm:$0xff]  ;;  %v105_v50 = vpack.c.bf16 %v89_v47, %v88_v46  ;;  %v74_v52 = vld [vmem:[#allocation2 + $0x80] sm:$0xff] }
  0x1a   :  { %380 = vmatpush.bf16.msra.mxu1 %v854_v33  ;;  %v97_v51 = vpack.c.bf16 %v73_v49, %v72_v48  ;;  %v75_v53 = vld [vmem:[#allocation2 + $0x88] sm:$0xff]  ;;  %v1028_v56 = vld [vmem:[%s1290_s2] ss:$0 sm:$0xff]  ;;  %v76_v62 = vld [vmem:[#allocation2 + $0x90] sm:$0xff] }
  0x1b   :  { %v98_v54 = vpack.c.bf16 %v75_v53, %v74_v52  ;;  %v77_v63 = vld [vmem:[#allocation2 + $0x98] sm:$0xff]  ;;  %v78_v8 = vld [vmem:[#allocation2 + $0xa0] sm:$0xff]  ;;  %v79_v9 = vld [vmem:[#allocation2 + $0xa8] sm:$0xff] }
  0x1c   :  { %v99_v1 = vpack.c.bf16 %v77_v63, %v76_v62  ;;  %v100_v11 = vpack.c.bf16 %v79_v9, %v78_v8  ;;  %v80_v18 = vld [vmem:[#allocation2 + $0xb0] sm:$0xff]  ;;  %v861_v62 = vld [vmem:[%s1293_s5 + $0x28] sm:$0xff]  ;;  %v860_v63 = vld [vmem:[%s1293_s5 + $0x20] sm:$0xff] }
  0x1d   :  { %178 = vmatpush.bf16.msra.mxu0 %v843_v4  ;;  %868 = vmatpush.bf16.msra.mxu3 %v843_v4 }
  0x1e   :  { %381 = vmatpush.bf16.msra.mxu1 %v853_v35 }
  0x21   :  { %179 = vmatpush.bf16.msra.mxu0 %v842_v5  ;;  %869 = vmatpush.bf16.msra.mxu3 %v842_v5 }
  0x22   :  { %382 = vmatpush.bf16.msra.mxu1 %v852_v38 }
  0x25   :  { %180 = vmatpush.bf16.msra.mxu0 %v841_v6  ;;  %870 = vmatpush.bf16.msra.mxu3 %v841_v6 }
  0x26   :  { %383 = vmatpush.bf16.msra.mxu1 %v851_v41 }
  0x29   :  { %181 = vmatpush.bf16.msra.mxu0 %v840_v7  ;;  %871 = vmatpush.bf16.msra.mxu3 %v840_v7 }
  0x2a   :  { %384 = vmatpush.bf16.msra.mxu1 %v850_v43 }
  0x2c   :  { %182 = vmatmul.bf16.vlgmr.msra.gmra.mxu0 %v90_v10  ;;  %242 = vmatmul.bf16.vlgmr.msra.gmra.mxu3 %v102_v22 }
  0x2d   :  { %872 = vmatpush.bf16.msrb.mxu3 %v855_v28 }
  0x2e   :  { %385 = vmatpush.bf16.msra.mxu1 %v849_v44 }
  0x31   :  { %873 = vmatpush.bf16.msrb.mxu3 %v854_v33 }
  0x32   :  { %386 = vmatpush.bf16.msra.mxu1 %v848_v45 }
  0x35   :  { %874 = vmatpush.bf16.msrb.mxu3 %v853_v35 }
  0x39   :  { %875 = vmatpush.bf16.msrb.mxu3 %v852_v38 }
  0x3c   :  { %187 = vmatmul.bf16.gmra.mxu0 %v91_v13  ;;  %247 = vmatmul.bf16.gmra.mxu3 %v103_v29 }
  0x3d   :  { %876 = vmatpush.bf16.msrb.mxu3 %v851_v41 }
  0x41   :  { %877 = vmatpush.bf16.msrb.mxu3 %v850_v43 }
  0x45   :  { %878 = vmatpush.bf16.msrb.mxu3 %v849_v44 }
  0x49   :  { %879 = vmatpush.bf16.msrb.mxu3 %v848_v45 }
  0x4c   :  { %192 = vmatmul.bf16.gmra.mxu0 %v92_v16  ;;  %252 = vmatmul.bf16.gmra.mxu3 %v104_v37 }
  0x5c   :  { %197 = vmatmul.bf16.gmra.mxu0 %v93_v19  ;;  %257 = vmatmul.bf16.gmra.mxu3 %v105_v50  ;;  %v81_v19 = vld [vmem:[#allocation2 + $0xb8] sm:$0xff] }
  0x5d   :  { %v101_v21 = vpack.c.bf16 %v81_v19, %v80_v18  ;;  %v863_v50 = vld [vmem:[%s1293_s5 + $0x38] sm:$0xff] }
  0x5e   :  { %584 = vmatpush.bf16.msra.mxu2 %v863_v50  ;;  %880 = vmatpush.bf16.msra.mxu3 %v863_v50 }
  0x6c   :  { %202 = vmatmul.bf16.gmra.mxu0 %v94_v25 }
  0x7c   :  { %207 = vmatmul.bf16.gmra.mxu0 %v95_v32 }
  0x8c   :  { %212 = vmatmul.bf16.gmra.mxu0 %v96_v42 }
  0x9c   :  { %217 = vmatmul.bf16.gmra.mxu0 %v97_v51 }
  0xa9   :  { %v183_v55 = vpop.f32.mrf.mxu0 }
  0xaa   :  { %v184_v57 = vadd.f32 %v1028_v56, %v183_v55 }
  0xac   :  { %222 = vmatmul.bf16.gmra.mxu0 %v98_v54  ;;  %v263_v60 = vmax.f32 %v184_v57, 0.0 }
  0xaf   :  { %v243_v30 = vpop.f32.mrf.mxu3 }
  0xb0   :  { %v244_v32 = vadd.f32 %v1028_v56, %v243_v30 }
  0xb1   :  { %v185_v58 = vpop.f32.mrf.mxu0 }
  0xb2   :  { %v186_v59 = vadd.f32 %v1028_v56, %v185_v58  ;;  %v287_v38 = vmax.f32 %v244_v32, 0.0  ;;  %v862_v58 = vld [vmem:[%s1293_s5 + $0x30] sm:$0xff] }
  0xb3   :  { %585 = vmatpush.bf16.msra.mxu2 %v862_v58  ;;  %881 = vmatpush.bf16.msra.mxu3 %v862_v58 }
  0xb4   :  { %v264_v61 = vmax.f32 %v186_v59, 0.0 }
  0xb6   :  { %v295_v0 = vpack.c.bf16 %v264_v61, %v263_v60 }
  0xb7   :  { %v245_v35 = vpop.f32.mrf.mxu3  ;;  %586 = vmatpush.bf16.msra.mxu2 %v861_v62  ;;  %882 = vmatpush.bf16.msra.mxu3 %v861_v62 }
  0xb8   :  { %387 = vmatmul.bf16.vlgmr.msra.gmra.mxu1 %v295_v0  ;;  %v246_v39 = vadd.f32 %v1028_v56, %v245_v35 }
  0xb9   :  { %v188_v2 = vpop.f32.mrf.mxu0 }
  0xba   :  { %v189_v3 = vadd.f32 %v1028_v56, %v188_v2  ;;  %v288_v41 = vmax.f32 %v246_v39, 0.0 }
  0xbb   :  { %587 = vmatpush.bf16.msra.mxu2 %v860_v63  ;;  %883 = vmatpush.bf16.msra.mxu3 %v860_v63 }
  0xbc   :  { %227 = vmatmul.bf16.gmra.mxu0 %v99_v1  ;;  %v265_v6 = vmax.f32 %v189_v3, 0.0  ;;  %v307_v42 = vpack.c.bf16 %v288_v41, %v287_v38  ;;  %v1083_v38 = vld [vmem:[%s1292_s4] ss:$0 sm:$0xff] }
  0xbe   :  { %447 = vmatmul.bf16.vlgmr.msrb.gmra.mxu3 %v307_v42 }
  0xbf   :  { %v248_v44 = vpop.f32.mrf.mxu3 }
  0xc0   :  { %v249_v46 = vadd.f32 %v1028_v56, %v248_v44 }
  0xc1   :  { %v190_v4 = vpop.f32.mrf.mxu0 }
  0xc2   :  { %v191_v5 = vadd.f32 %v1028_v56, %v190_v4  ;;  %v289_v53 = vmax.f32 %v249_v46, 0.0 }
  0xc4   :  { %v266_v7 = vmax.f32 %v191_v5, 0.0  ;;  %v859_v5 = vld [vmem:[%s1293_s5 + $0x18] sm:$0xff] }
  0xc5   :  { %588 = vmatpush.bf16.msra.mxu2 %v859_v5  ;;  %884 = vmatpush.bf16.msra.mxu3 %v859_v5 }
  0xc6   :  { %v296_v10 = vpack.c.bf16 %v266_v7, %v265_v6 }
  0xc7   :  { %v250_v49 = vpop.f32.mrf.mxu3 }
  0xc8   :  { %392 = vmatmul.bf16.gmra.mxu1 %v296_v10  ;;  %v251_v54 = vadd.f32 %v1028_v56, %v250_v49 }
  0xc9   :  { %v193_v12 = vpop.f32.mrf.mxu0 }
  0xca   :  { %v194_v13 = vadd.f32 %v1028_v56, %v193_v12  ;;  %v290_v57 = vmax.f32 %v251_v54, 0.0  ;;  %v858_v12 = vld [vmem:[%s1293_s5 + $0x10] sm:$0xff] }
  0xcb   :  { %589 = vmatpush.bf16.msra.mxu2 %v858_v12  ;;  %885 = vmatpush.bf16.msra.mxu3 %v858_v12 }
  0xcc   :  { %232 = vmatmul.bf16.gmra.mxu0 %v100_v11  ;;  %v267_v16 = vmax.f32 %v194_v13, 0.0  ;;  %v308_v59 = vpack.c.bf16 %v290_v57, %v289_v53 }
  0xce   :  { %452 = vmatmul.bf16.gmra.mxu3 %v308_v59 }
  0xcf   :  { %v253_v61 = vpop.f32.mrf.mxu3 }
  0xd0   :  { %v254_v1 = vadd.f32 %v1028_v56, %v253_v61 }
  0xd1   :  { %v195_v14 = vpop.f32.mrf.mxu0 }
  0xd2   :  { %v196_v15 = vadd.f32 %v1028_v56, %v195_v14  ;;  %v291_v8 = vmax.f32 %v254_v1, 0.0 }
  0xd4   :  { %v268_v17 = vmax.f32 %v196_v15, 0.0 }
  0xd6   :  { %v297_v20 = vpack.c.bf16 %v268_v17, %v267_v16  ;;  %v857_v16 = vld [vmem:[%s1293_s5 + $0x8] sm:$0xff]  ;;  %v856_v17 = vld [vmem:[%s1293_s5] sm:$0xff] }
  0xd7   :  { %v255_v4 = vpop.f32.mrf.mxu3  ;;  %590 = vmatpush.bf16.msra.mxu2 %v857_v16  ;;  %886 = vmatpush.bf16.msra.mxu3 %v857_v16 }
  0xd8   :  { %397 = vmatmul.bf16.gmra.mxu1 %v297_v20  ;;  %v256_v9 = vadd.f32 %v1028_v56, %v255_v4 }
  0xd9   :  { %v198_v22 = vpop.f32.mrf.mxu0 }
  0xda   :  { %v199_v23 = vadd.f32 %v1028_v56, %v198_v22  ;;  %v292_v11 = vmax.f32 %v256_v9, 0.0 }
  0xdb   :  { %591 = vmatpush.bf16.msra.mxu2 %v856_v17  ;;  %887 = vmatpush.bf16.msra.mxu3 %v856_v17 }
  0xdc   :  { %237 = vmatmul.bf16.gmra.mxu0 %v101_v21  ;;  %v269_v26 = vmax.f32 %v199_v23, 0.0  ;;  %v309_v13 = vpack.c.bf16 %v292_v11, %v291_v8 }
  0xde   :  { %457 = vmatmul.bf16.gmra.mxu3 %v309_v13 }
  0xdf   :  { %v258_v15 = vpop.f32.mrf.mxu3 }
  0xe0   :  { %v259_v19 = vadd.f32 %v1028_v56, %v258_v15 }
  0xe1   :  { %v200_v24 = vpop.f32.mrf.mxu0 }
  0xe2   :  { %v201_v25 = vadd.f32 %v1028_v56, %v200_v24 }
  0xe4   :  { %v270_v27 = vmax.f32 %v201_v25, 0.0  ;;  %v293_v25 = vmax.f32 %v259_v19, 0.0 }
  0xe6   :  { %v298_v28 = vpack.c.bf16 %v270_v27, %v269_v26 }
  0xe7   :  { %v260_v22 = vpop.f32.mrf.mxu3 }
  0xe8   :  { %402 = vmatmul.bf16.gmra.mxu1 %v298_v28  ;;  %v261_v26 = vadd.f32 %v1028_v56, %v260_v22 }
  0xe9   :  { %v203_v29 = vpop.f32.mrf.mxu0 }
  0xea   :  { %v204_v31 = vadd.f32 %v1028_v56, %v203_v29  ;;  %v294_v28 = vmax.f32 %v261_v26, 0.0 }
  0xec   :  { %v271_v36 = vmax.f32 %v204_v31, 0.0  ;;  %v310_v29 = vpack.c.bf16 %v294_v28, %v293_v25 }
  0xee   :  { %462 = vmatmul.bf16.gmra.mxu3 %v310_v29 }
  0xf1   :  { %v205_v33 = vpop.f32.mrf.mxu0 }
  0xf2   :  { %v206_v34 = vadd.f32 %v1028_v56, %v205_v33 }
  0xf4   :  { %v272_v37 = vmax.f32 %v206_v34, 0.0 }
  0xf6   :  { %v299_v40 = vpack.c.bf16 %v272_v37, %v271_v36 }
  0xf8   :  { %407 = vmatmul.bf16.gmra.mxu1 %v299_v40 }
  0xf9   :  { %v208_v43 = vpop.f32.mrf.mxu0 }
  0xfa   :  { %v209_v45 = vadd.f32 %v1028_v56, %v208_v43 }
  0xfc   :  { %v273_v51 = vmax.f32 %v209_v45, 0.0 }
 0x101   :  { %v210_v47 = vpop.f32.mrf.mxu0 }
 0x102   :  { %v211_v48 = vadd.f32 %v1028_v56, %v210_v47 }
 0x104   :  { %v274_v52 = vmax.f32 %v211_v48, 0.0 }
 0x106   :  { %v300_v55 = vpack.c.bf16 %v274_v52, %v273_v51 }
 0x108   :  { %412 = vmatmul.bf16.gmra.mxu1 %v300_v55 }
 0x109   :  { %v213_v60 = vpop.f32.mrf.mxu0 }
 0x10a   :  { %v214_v0 = vadd.f32 %v1028_v56, %v213_v60 }
 0x10c   :  { %v275_v6 = vmax.f32 %v214_v0, 0.0 }
 0x111   :  { %v215_v2 = vpop.f32.mrf.mxu0 }
 0x112   :  { %v216_v3 = vadd.f32 %v1028_v56, %v215_v2 }
 0x114   :  { %v276_v7 = vmax.f32 %v216_v3, 0.0 }
 0x116   :  { %v301_v10 = vpack.c.bf16 %v276_v7, %v275_v6 }
 0x118   :  { %417 = vmatmul.bf16.gmra.mxu1 %v301_v10 }
 0x119   :  { %v218_v14 = vpop.f32.mrf.mxu0 }
 0x11a   :  { %v219_v18 = vadd.f32 %v1028_v56, %v218_v14 }
 0x11c   :  { %v277_v23 = vmax.f32 %v219_v18, 0.0 }
 0x121   :  { %v220_v20 = vpop.f32.mrf.mxu0 }
 0x122   :  { %v221_v21 = vadd.f32 %v1028_v56, %v220_v20 }
 0x124   :  { %v278_v24 = vmax.f32 %v221_v21, 0.0 }
 0x126   :  { %v302_v27 = vpack.c.bf16 %v278_v24, %v277_v23 }
 0x128   :  { %422 = vmatmul.bf16.gmra.mxu1 %v302_v27 }
 0x129   :  { %v223_v30 = vpop.f32.mrf.mxu0 }
 0x12a   :  { %v224_v31 = vadd.f32 %v1028_v56, %v223_v30 }
 0x12c   :  { %v279_v34 = vmax.f32 %v224_v31, 0.0 }
 0x131   :  { %v225_v32 = vpop.f32.mrf.mxu0 }
 0x132   :  { %v226_v33 = vadd.f32 %v1028_v56, %v225_v32 }
 0x134   :  { %v280_v35 = vmax.f32 %v226_v33, 0.0 }
 0x135   :  { %v388_v36 = vpop.f32.mrf.mxu1 }
 0x136   :  { %v303_v37 = vpack.c.bf16 %v280_v35, %v279_v34  ;;  %v389_v40 = vadd.f32 %v1083_v38, %v388_v36 }
 0x138   :  { %427 = vmatmul.bf16.gmra.mxu1 %v303_v37  ;;  %v468_v43 = vmax.f32 %v389_v40, 0.0 }
 0x139   :  { %v228_v39 = vpop.f32.mrf.mxu0 }
 0x13a   :  { %v229_v44 = vadd.f32 %v1028_v56, %v228_v39 }
 0x13c   :  { %v281_v49 = vmax.f32 %v229_v44, 0.0 }
 0x13d   :  { %v390_v41 = vpop.f32.mrf.mxu1 }
 0x13e   :  { %v391_v42 = vadd.f32 %v1083_v38, %v390_v41 }
 0x140   :  { %v469_v45 = vmax.f32 %v391_v42, 0.0 }
 0x141   :  { %v230_v46 = vpop.f32.mrf.mxu0  ;;  %v448_v26 = vpop.f32.mrf.mxu3 }
 0x142   :  { %v231_v47 = vadd.f32 %v1028_v56, %v230_v46  ;;  %v500_v48 = vpack.c.bf16 %v469_v45, %v468_v43  ;;  %v449_v31 = vadd.f32 %v1083_v38, %v448_v26 }
 0x144   :  { %v282_v50 = vmax.f32 %v231_v47, 0.0  ;;  %592 = vmatmul.bf16.vlgmr.msra.gmra.mxu2 %v500_v48  ;;  %v492_v34 = vmax.f32 %v449_v31, 0.0 }
 0x145   :  { %v393_v51 = vpop.f32.mrf.mxu1 }
 0x146   :  { %v304_v52 = vpack.c.bf16 %v282_v50, %v281_v49  ;;  %v394_v54 = vadd.f32 %v1083_v38, %v393_v51 }
 0x148   :  { %432 = vmatmul.bf16.gmra.mxu1 %v304_v52  ;;  %v470_v58 = vmax.f32 %v394_v54, 0.0 }
 0x149   :  { %v233_v53 = vpop.f32.mrf.mxu0  ;;  %v450_v33 = vpop.f32.mrf.mxu3 }
 0x14a   :  { %v234_v59 = vadd.f32 %v1028_v56, %v233_v53  ;;  %v451_v35 = vadd.f32 %v1083_v38, %v450_v33 }
 0x14c   :  { %v283_v0 = vmax.f32 %v234_v59, 0.0  ;;  %v493_v36 = vmax.f32 %v451_v35, 0.0 }
 0x14d   :  { %v395_v55 = vpop.f32.mrf.mxu1 }
 0x14e   :  { %v396_v57 = vadd.f32 %v1083_v38, %v395_v55  ;;  %v512_v37 = vpack.c.bf16 %v493_v36, %v492_v34 }
 0x150   :  { %v471_v60 = vmax.f32 %v396_v57, 0.0  ;;  %652 = vmatmul.bf16.vlgmr.msra.gmra.mxu3 %v512_v37 }
 0x151   :  { %v235_v61 = vpop.f32.mrf.mxu0  ;;  %v453_v41 = vpop.f32.mrf.mxu3 }
 0x152   :  { %v236_v62 = vadd.f32 %v1028_v56, %v235_v61  ;;  %v501_v63 = vpack.c.bf16 %v471_v60, %v470_v58  ;;  %v454_v46 = vadd.f32 %v1083_v38, %v453_v41 }
 0x154   :  { %v284_v1 = vmax.f32 %v236_v62, 0.0  ;;  %597 = vmatmul.bf16.gmra.mxu2 %v501_v63  ;;  %v494_v49 = vmax.f32 %v454_v46, 0.0 }
 0x155   :  { %v398_v2 = vpop.f32.mrf.mxu1 }
 0x156   :  { %v305_v3 = vpack.c.bf16 %v284_v1, %v283_v0  ;;  %v399_v5 = vadd.f32 %v1083_v38, %v398_v2 }
 0x158   :  { %437 = vmatmul.bf16.gmra.mxu1 %v305_v3  ;;  %v472_v8 = vmax.f32 %v399_v5, 0.0 }
 0x159   :  { %v238_v4 = vpop.f32.mrf.mxu0  ;;  %v455_v48 = vpop.f32.mrf.mxu3 }
 0x15a   :  { %v239_v9 = vadd.f32 %v1028_v56, %v238_v4  ;;  %v456_v50 = vadd.f32 %v1083_v38, %v455_v48 }
 0x15c   :  { %v285_v14 = vmax.f32 %v239_v9, 0.0  ;;  %v495_v51 = vmax.f32 %v456_v50, 0.0 }
 0x15d   :  { %v400_v6 = vpop.f32.mrf.mxu1 }
 0x15e   :  { %v401_v7 = vadd.f32 %v1083_v38, %v400_v6  ;;  %v513_v52 = vpack.c.bf16 %v495_v51, %v494_v49 }
 0x160   :  { %v473_v10 = vmax.f32 %v401_v7, 0.0  ;;  %657 = vmatmul.bf16.gmra.mxu3 %v513_v52 }
 0x161   :  { %v240_v11 = vpop.f32.mrf.mxu0  ;;  %v458_v55 = vpop.f32.mrf.mxu3 }
 0x162   :  { %v241_v12 = vadd.f32 %v1028_v56, %v240_v11  ;;  %v502_v13 = vpack.c.bf16 %v473_v10, %v472_v8  ;;  %v459_v61 = vadd.f32 %v1083_v38, %v458_v55 }
 0x164   :  { %v286_v15 = vmax.f32 %v241_v12, 0.0  ;;  %602 = vmatmul.bf16.gmra.mxu2 %v502_v13  ;;  %v496_v0 = vmax.f32 %v459_v61, 0.0 }
 0x165   :  { %v403_v16 = vpop.f32.mrf.mxu1 }
 0x166   :  { %v306_v17 = vpack.c.bf16 %v286_v15, %v285_v14  ;;  %v404_v18 = vadd.f32 %v1083_v38, %v403_v16 }
 0x168   :  { %442 = vmatmul.bf16.gmra.mxu1 %v306_v17  ;;  %v474_v21 = vmax.f32 %v404_v18, 0.0 }
 0x169   :  { %v460_v63 = vpop.f32.mrf.mxu3 }
 0x16a   :  { %v461_v1 = vadd.f32 %v1083_v38, %v460_v63 }
 0x16c   :  { %v497_v2 = vmax.f32 %v461_v1, 0.0 }
 0x16d   :  { %v405_v19 = vpop.f32.mrf.mxu1 }
 0x16e   :  { %v406_v20 = vadd.f32 %v1083_v38, %v405_v19  ;;  %v514_v3 = vpack.c.bf16 %v497_v2, %v496_v0 }
 0x170   :  { %v475_v22 = vmax.f32 %v406_v20, 0.0  ;;  %662 = vmatmul.bf16.gmra.mxu3 %v514_v3 }
 0x171   :  { %v463_v6 = vpop.f32.mrf.mxu3 }
 0x172   :  { %v503_v23 = vpack.c.bf16 %v475_v22, %v474_v21  ;;  %v464_v11 = vadd.f32 %v1083_v38, %v463_v6 }
 0x174   :  { %607 = vmatmul.bf16.gmra.mxu2 %v503_v23  ;;  %v498_v14 = vmax.f32 %v464_v11, 0.0 }
 0x175   :  { %v408_v24 = vpop.f32.mrf.mxu1 }
 0x176   :  { %v409_v25 = vadd.f32 %v1083_v38, %v408_v24  ;;  %v1120_v24 = vld [vmem:[%s1294_s6] ss:$0 sm:$0xff] }
 0x178   :  { %v476_v28 = vmax.f32 %v409_v25, 0.0 }
 0x179   :  { %v465_v13 = vpop.f32.mrf.mxu3 }
 0x17a   :  { %v466_v15 = vadd.f32 %v1083_v38, %v465_v13 }
 0x17c   :  { %v499_v16 = vmax.f32 %v466_v15, 0.0 }
 0x17d   :  { %v410_v56 = vpop.f32.mrf.mxu1 }
 0x17e   :  { %v411_v27 = vadd.f32 %v1083_v38, %v410_v56  ;;  %v515_v17 = vpack.c.bf16 %v499_v16, %v498_v14 }
 0x180   :  { %v477_v29 = vmax.f32 %v411_v27, 0.0  ;;  %667 = vmatmul.bf16.gmra.mxu3 %v515_v17 }
 0x182   :  { %v504_v30 = vpack.c.bf16 %v477_v29, %v476_v28 }
 0x184   :  { %612 = vmatmul.bf16.gmra.mxu2 %v504_v30 }
 0x185   :  { %v413_v32 = vpop.f32.mrf.mxu1 }
 0x186   :  { %v414_v39 = vadd.f32 %v1083_v38, %v413_v32 }
 0x188   :  { %v478_v43 = vmax.f32 %v414_v39, 0.0 }
 0x18d   :  { %v415_v40 = vpop.f32.mrf.mxu1 }
 0x18e   :  { %v416_v42 = vadd.f32 %v1083_v38, %v415_v40 }
 0x190   :  { %v479_v44 = vmax.f32 %v416_v42, 0.0 }
 0x192   :  { %v505_v45 = vpack.c.bf16 %v479_v44, %v478_v43 }
 0x194   :  { %617 = vmatmul.bf16.gmra.mxu2 %v505_v45 }
 0x195   :  { %v418_v47 = vpop.f32.mrf.mxu1 }
 0x196   :  { %v419_v53 = vadd.f32 %v1083_v38, %v418_v47 }
 0x198   :  { %v480_v58 = vmax.f32 %v419_v53, 0.0 }
 0x19d   :  { %v420_v54 = vpop.f32.mrf.mxu1 }
 0x19e   :  { %v421_v57 = vadd.f32 %v1083_v38, %v420_v54 }
 0x1a0   :  { %v481_v59 = vmax.f32 %v421_v57, 0.0 }
 0x1a2   :  { %v506_v60 = vpack.c.bf16 %v481_v59, %v480_v58 }
 0x1a4   :  { %622 = vmatmul.bf16.gmra.mxu2 %v506_v60 }
 0x1a5   :  { %v423_v62 = vpop.f32.mrf.mxu1 }
 0x1a6   :  { %v424_v4 = vadd.f32 %v1083_v38, %v423_v62 }
 0x1a8   :  { %v482_v8 = vmax.f32 %v424_v4, 0.0 }
 0x1ad   :  { %v425_v5 = vpop.f32.mrf.mxu1 }
 0x1ae   :  { %v426_v7 = vadd.f32 %v1083_v38, %v425_v5 }
 0x1b0   :  { %v483_v9 = vmax.f32 %v426_v7, 0.0 }
 0x1b2   :  { %v507_v10 = vpack.c.bf16 %v483_v9, %v482_v8 }
 0x1b4   :  { %627 = vmatmul.bf16.gmra.mxu2 %v507_v10 }
 0x1b5   :  { %v428_v12 = vpop.f32.mrf.mxu1 }
 0x1b6   :  { %v429_v18 = vadd.f32 %v1083_v38, %v428_v12 }
 0x1b8   :  { %v484_v21 = vmax.f32 %v429_v18, 0.0 }
 0x1bd   :  { %v430_v19 = vpop.f32.mrf.mxu1 }
 0x1be   :  { %v431_v20 = vadd.f32 %v1083_v38, %v430_v19 }
 0x1c0   :  { %v485_v22 = vmax.f32 %v431_v20, 0.0 }
 0x1c2   :  { %v508_v23 = vpack.c.bf16 %v485_v22, %v484_v21 }
 0x1c4   :  { %632 = vmatmul.bf16.gmra.mxu2 %v508_v23 }
 0x1c5   :  { %v433_v25 = vpop.f32.mrf.mxu1 }
 0x1c6   :  { %v434_v28 = vadd.f32 %v1083_v38, %v433_v25 }
 0x1c7   :  { %v593_v56 = vpop.f32.mrf.mxu2 }
 0x1c8   :  { %v594_v26 = vadd.f32 %v1120_v24, %v593_v56  ;;  %v486_v32 = vmax.f32 %v434_v28, 0.0 }
 0x1ca   :  { %v673_v27 = vmax.f32 %v594_v26, 0.0 }
 0x1cc   :  { %706 = vst.msk [vmem:[%s1295_s7] sm:$0xff] %vm705_vm0, %v673_v27 }
 0x1cd   :  { %v435_v29 = vpop.f32.mrf.mxu1 }
 0x1ce   :  { %v436_v30 = vadd.f32 %v1083_v38, %v435_v29 }
 0x1cf   :  { %v595_v31 = vpop.f32.mrf.mxu2 }
 0x1d0   :  { %v487_v33 = vmax.f32 %v436_v30, 0.0  ;;  %v596_v34 = vadd.f32 %v1120_v24, %v595_v31 }
 0x1d2   :  { %v674_v35 = vmax.f32 %v596_v34, 0.0  ;;  %v509_v36 = vpack.c.bf16 %v487_v33, %v486_v32 }
 0x1d3   :  { %v653_v10 = vpop.f32.mrf.mxu3 }
 0x1d4   :  { %707 = vst.msk [vmem:[%s1295_s7 + $0x8] sm:$0xff] %vm705_vm0, %v674_v35  ;;  %637 = vmatmul.bf16.gmra.mxu2 %v509_v36  ;;  %v654_v13 = vadd.f32 %v1120_v24, %v653_v10 }
 0x1d5   :  { %v438_v37 = vpop.f32.mrf.mxu1 }
 0x1d6   :  { %v439_v42 = vadd.f32 %v1083_v38, %v438_v37  ;;  %v697_v14 = vmax.f32 %v654_v13, 0.0 }
 0x1d7   :  { %v598_v39 = vpop.f32.mrf.mxu2 }
 0x1d8   :  { %v599_v40 = vadd.f32 %v1120_v24, %v598_v39  ;;  %v488_v46 = vmax.f32 %v439_v42, 0.0  ;;  %730 = vst.msk [vmem:[%s1295_s7 + $0xc0] sm:$0xff] %vm705_vm0, %v697_v14 }
 0x1da   :  { %v675_v41 = vmax.f32 %v599_v40, 0.0 }
 0x1db   :  { %v655_v16 = vpop.f32.mrf.mxu3 }
 0x1dc   :  { %708 = vst.msk [vmem:[%s1295_s7 + $0x10] sm:$0xff] %vm705_vm0, %v675_v41  ;;  %v656_v18 = vadd.f32 %v1120_v24, %v655_v16 }
 0x1dd   :  { %v440_v43 = vpop.f32.mrf.mxu1 }
 0x1de   :  { %v441_v44 = vadd.f32 %v1083_v38, %v440_v43  ;;  %v698_v20 = vmax.f32 %v656_v18, 0.0 }
 0x1df   :  { %v600_v45 = vpop.f32.mrf.mxu2 }
 0x1e0   :  { %v489_v47 = vmax.f32 %v441_v44, 0.0  ;;  %v601_v48 = vadd.f32 %v1120_v24, %v600_v45  ;;  %731 = vst.msk [vmem:[%s1295_s7 + $0xc8] sm:$0xff] %vm705_vm0, %v698_v20 }
 0x1e2   :  { %v676_v49 = vmax.f32 %v601_v48, 0.0  ;;  %v510_v50 = vpack.c.bf16 %v489_v47, %v488_v46 }
 0x1e3   :  { %v658_v22 = vpop.f32.mrf.mxu3 }
 0x1e4   :  { %709 = vst.msk [vmem:[%s1295_s7 + $0x18] sm:$0xff] %vm705_vm0, %v676_v49  ;;  %642 = vmatmul.bf16.gmra.mxu2 %v510_v50  ;;  %v659_v56 = vadd.f32 %v1120_v24, %v658_v22 }
 0x1e5   :  { %v443_v51 = vpop.f32.mrf.mxu1 }
 0x1e6   :  { %v444_v55 = vadd.f32 %v1083_v38, %v443_v51  ;;  %v699_v26 = vmax.f32 %v659_v56, 0.0 }
 0x1e7   :  { %v603_v52 = vpop.f32.mrf.mxu2 }
 0x1e8   :  { %v604_v53 = vadd.f32 %v1120_v24, %v603_v52  ;;  %v490_v60 = vmax.f32 %v444_v55, 0.0  ;;  %732 = vst.msk [vmem:[%s1295_s7 + $0xd0] sm:$0xff] %vm705_vm0, %v699_v26 }
 0x1ea   :  { %v677_v54 = vmax.f32 %v604_v53, 0.0 }
 0x1eb   :  { %v660_v28 = vpop.f32.mrf.mxu3 }
 0x1ec   :  { %710 = vst.msk [vmem:[%s1295_s7 + $0x20] sm:$0xff] %vm705_vm0, %v677_v54  ;;  %v661_v30 = vadd.f32 %v1120_v24, %v660_v28 }
 0x1ed   :  { %v445_v57 = vpop.f32.mrf.mxu1 }
 0x1ee   :  { %v446_v58 = vadd.f32 %v1083_v38, %v445_v57  ;;  %v700_v32 = vmax.f32 %v661_v30, 0.0 }
 0x1ef   :  { %v605_v59 = vpop.f32.mrf.mxu2 }
 0x1f0   :  { %v491_v61 = vmax.f32 %v446_v58, 0.0  ;;  %v606_v62 = vadd.f32 %v1120_v24, %v605_v59  ;;  %733 = vst.msk [vmem:[%s1295_s7 + $0xd8] sm:$0xff] %vm705_vm0, %v700_v32 }
 0x1f2   :  { %v678_v63 = vmax.f32 %v606_v62, 0.0  ;;  %v511_v0 = vpack.c.bf16 %v491_v61, %v490_v60 }
 0x1f3   :  { %v663_v34 = vpop.f32.mrf.mxu3 }
 0x1f4   :  { %711 = vst.msk [vmem:[%s1295_s7 + $0x28] sm:$0xff] %vm705_vm0, %v678_v63  ;;  %647 = vmatmul.bf16.gmra.mxu2 %v511_v0  ;;  %v664_v37 = vadd.f32 %v1120_v24, %v663_v34 }
 0x1f6   :  { %v701_v39 = vmax.f32 %v664_v37, 0.0 }
 0x1f7   :  { %v608_v1 = vpop.f32.mrf.mxu2 }
 0x1f8   :  { %v609_v2 = vadd.f32 %v1120_v24, %v608_v1  ;;  %734 = vst.msk [vmem:[%s1295_s7 + $0xe0] sm:$0xff] %vm705_vm0, %v701_v39 }
 0x1fa   :  { %v679_v3 = vmax.f32 %v609_v2, 0.0 }
 0x1fb   :  { %v665_v41 = vpop.f32.mrf.mxu3 }
 0x1fc   :  { %712 = vst.msk [vmem:[%s1295_s7 + $0x30] sm:$0xff] %vm705_vm0, %v679_v3  ;;  %v666_v43 = vadd.f32 %v1120_v24, %v665_v41 }
 0x1fe   :  { %v702_v45 = vmax.f32 %v666_v43, 0.0 }
 0x1ff   :  { %v610_v38 = vpop.f32.mrf.mxu2 }
 0x200   :  { %v611_v4 = vadd.f32 %v1120_v24, %v610_v38  ;;  %735 = vst.msk [vmem:[%s1295_s7 + $0xe8] sm:$0xff] %vm705_vm0, %v702_v45 }
 0x202   :  { %v680_v5 = vmax.f32 %v611_v4, 0.0 }
 0x203   :  { %v668_v47 = vpop.f32.mrf.mxu3 }
 0x204   :  { %713 = vst.msk [vmem:[%s1295_s7 + $0x38] sm:$0xff] %vm705_vm0, %v680_v5  ;;  %v669_v50 = vadd.f32 %v1120_v24, %v668_v47 }
 0x206   :  { %v703_v51 = vmax.f32 %v669_v50, 0.0 }
 0x207   :  { %v613_v6 = vpop.f32.mrf.mxu2 }
 0x208   :  { %v614_v7 = vadd.f32 %v1120_v24, %v613_v6  ;;  %736 = vst.msk [vmem:[%s1295_s7 + $0xf0] sm:$0xff] %vm705_vm0, %v703_v51 }
 0x20a   :  { %v681_v8 = vmax.f32 %v614_v7, 0.0 }
 0x20b   :  { %v670_v53 = vpop.f32.mrf.mxu3 }
 0x20c   :  { %714 = vst.msk [vmem:[%s1295_s7 + $0x40] sm:$0xff] %vm705_vm0, %v681_v8  ;;  %v671_v55 = vadd.f32 %v1120_v24, %v670_v53 }
 0x20e   :  { %v704_v58 = vmax.f32 %v671_v55, 0.0 }
 0x20f   :  { %v615_v9 = vpop.f32.mrf.mxu2 }
 0x210   :  { %v616_v11 = vadd.f32 %v1120_v24, %v615_v9  ;;  %737 = vst.msk [vmem:[%s1295_s7 + $0xf8] sm:$0xff] %vm705_vm0, %v704_v58 }
 0x212   :  { %v682_v12 = vmax.f32 %v616_v11, 0.0 }
 0x214   :  { %715 = vst.msk [vmem:[%s1295_s7 + $0x48] sm:$0xff] %vm705_vm0, %v682_v12 }
 0x217   :  { %v618_v15 = vpop.f32.mrf.mxu2 }
 0x218   :  { %v619_v17 = vadd.f32 %v1120_v24, %v618_v15 }
 0x21a   :  { %v683_v19 = vmax.f32 %v619_v17, 0.0 }
 0x21c   :  { %716 = vst.msk [vmem:[%s1295_s7 + $0x50] sm:$0xff] %vm705_vm0, %v683_v19 }
 0x21f   :  { %v620_v21 = vpop.f32.mrf.mxu2 }
 0x220   :  { %v621_v23 = vadd.f32 %v1120_v24, %v620_v21 }
 0x222   :  { %v684_v25 = vmax.f32 %v621_v23, 0.0 }
 0x224   :  { %717 = vst.msk [vmem:[%s1295_s7 + $0x58] sm:$0xff] %vm705_vm0, %v684_v25 }
 0x227   :  { %v623_v27 = vpop.f32.mrf.mxu2 }
 0x228   :  { %v624_v29 = vadd.f32 %v1120_v24, %v623_v27 }
 0x22a   :  { %v685_v31 = vmax.f32 %v624_v29, 0.0 }
 0x22c   :  { %718 = vst.msk [vmem:[%s1295_s7 + $0x60] sm:$0xff] %vm705_vm0, %v685_v31 }
 0x22f   :  { %v625_v33 = vpop.f32.mrf.mxu2 }
 0x230   :  { %v626_v35 = vadd.f32 %v1120_v24, %v625_v33 }
 0x232   :  { %v686_v36 = vmax.f32 %v626_v35, 0.0 }
 0x234   :  { %719 = vst.msk [vmem:[%s1295_s7 + $0x68] sm:$0xff] %vm705_vm0, %v686_v36 }
 0x237   :  { %v628_v40 = vpop.f32.mrf.mxu2 }
 0x238   :  { %v629_v42 = vadd.f32 %v1120_v24, %v628_v40 }
 0x23a   :  { %v687_v44 = vmax.f32 %v629_v42, 0.0 }
 0x23c   :  { %720 = vst.msk [vmem:[%s1295_s7 + $0x70] sm:$0xff] %vm705_vm0, %v687_v44 }
 0x23f   :  { %v630_v46 = vpop.f32.mrf.mxu2 }
 0x240   :  { %v631_v48 = vadd.f32 %v1120_v24, %v630_v46 }
 0x242   :  { %v688_v49 = vmax.f32 %v631_v48, 0.0 }
 0x244   :  { %721 = vst.msk [vmem:[%s1295_s7 + $0x78] sm:$0xff] %vm705_vm0, %v688_v49 }
 0x247   :  { %v633_v52 = vpop.f32.mrf.mxu2 }
 0x248   :  { %v634_v54 = vadd.f32 %v1120_v24, %v633_v52 }
 0x24a   :  { %v689_v57 = vmax.f32 %v634_v54, 0.0 }
 0x24c   :  { %722 = vst.msk [vmem:[%s1295_s7 + $0x80] sm:$0xff] %vm705_vm0, %v689_v57 }
 0x24f   :  { %v635_v59 = vpop.f32.mrf.mxu2 }
 0x250   :  { %v636_v60 = vadd.f32 %v1120_v24, %v635_v59 }
 0x252   :  { %v690_v61 = vmax.f32 %v636_v60, 0.0 }
 0x254   :  { %723 = vst.msk [vmem:[%s1295_s7 + $0x88] sm:$0xff] %vm705_vm0, %v690_v61 }
 0x257   :  { %v638_v62 = vpop.f32.mrf.mxu2 }
 0x258   :  { %v639_v63 = vadd.f32 %v1120_v24, %v638_v62 }
 0x25a   :  { %v691_v0 = vmax.f32 %v639_v63, 0.0 }
 0x25c   :  { %724 = vst.msk [vmem:[%s1295_s7 + $0x90] sm:$0xff] %vm705_vm0, %v691_v0 }
 0x25f   :  { %v640_v1 = vpop.f32.mrf.mxu2 }
 0x260   :  { %v641_v2 = vadd.f32 %v1120_v24, %v640_v1 }
 0x262   :  { %v692_v3 = vmax.f32 %v641_v2, 0.0 }
 0x264   :  { %725 = vst.msk [vmem:[%s1295_s7 + $0x98] sm:$0xff] %vm705_vm0, %v692_v3 }
 0x267   :  { %v643_v38 = vpop.f32.mrf.mxu2 }
 0x268   :  { %v644_v4 = vadd.f32 %v1120_v24, %v643_v38 }
 0x26a   :  { %v693_v5 = vmax.f32 %v644_v4, 0.0 }
 0x26c   :  { %726 = vst.msk [vmem:[%s1295_s7 + $0xa0] sm:$0xff] %vm705_vm0, %v693_v5 }
 0x26f   :  { %v645_v6 = vpop.f32.mrf.mxu2 }
 0x270   :  { %v646_v7 = vadd.f32 %v1120_v24, %v645_v6 }
 0x272   :  { %v694_v8 = vmax.f32 %v646_v7, 0.0 }
 0x274   :  { %727 = vst.msk [vmem:[%s1295_s7 + $0xa8] sm:$0xff] %vm705_vm0, %v694_v8 }
 0x277   :  { %v648_v9 = vpop.f32.mrf.mxu2 }
 0x278   :  { %v649_v10 = vadd.f32 %v1120_v24, %v648_v9 }
 0x27a   :  { %v695_v11 = vmax.f32 %v649_v10, 0.0 }
 0x27c   :  { %728 = vst.msk [vmem:[%s1295_s7 + $0xb0] sm:$0xff] %vm705_vm0, %v695_v11 }
 0x27f   :  { %v650_v12 = vpop.f32.mrf.mxu2 }
 0x280   :  { %v651_v13 = vadd.f32 %v1120_v24, %v650_v12 }
 0x282   :  { %v696_v14 = vmax.f32 %v651_v13, 0.0 }
 0x284   :  { %729 = vst.msk [vmem:[%s1295_s7 + $0xb8] sm:$0xff] %vm705_vm0, %v696_v14 }
 0x285   :  { %742 = vsyncpa [#allocation3], 1 }
 0x286   :  { %743 = vsyncpa [#allocation5], 1 }

</bundles_post_ra>
